<compile_context>
chip_gen: v7x
topology: tpu7x:2x2x1
jax: 0.10.0
libtpu: 0.0.40
codegen_flags: <defaults>
</compile_context>

<pallas_src>
import functools

import jax
import jax.numpy as jnp
from jax.experimental import pallas as pl
from jax.experimental.pallas import tpu as pltpu

NUM_STATE = 4      # CartPole-v0 observation dim
HIDDEN = 100
OUT = 1

FEAT_PAD = 8       # 4 obs dims + 1 bias ("ones") row + 3 zero rows (sublane multiple)
HIDDEN_PAD = 128   # 100 -> 128 (lane multiple)
W2_ROWS = 8        # value-head weights as a native (8,128) tile; row 0 holds w2


def _round_up(a: int, b: int) -> int:
    return ((a + b - 1) // b) * b


def critic_kernel(xT_ref, w1p_ref, w2p_ref, b2_ref, o_ref):
    """One batch tile in feature-major (batch-on-lanes) layout.

    xT : [8, Bt]    rows 0..3 = obs, row 4 = 1.0 (bias input), rows 5..7 = 0
    w1p: [128, 8]   cols 0..3 = W1^T (padded 100->128), col 4 = b1, cols 5..7 = 0
    w2p: [8, 128]   row 0 = state_value weight, rows 1..7 = 0
    b2 : (1,) SMEM  scalar state_value bias
    o  : [1, Bt]    value row (lane-dense)
    """
    # fc1 (+ bias folded via the ones row): MXU [128,8] @ [8,Bt] -> [128,Bt]
    h = jnp.dot(w1p_ref[...], xT_ref[...], preferred_element_type=jnp.float32)
    h = jnp.maximum(h, 0.0)                                    # ReLU (VPU)
    # Value head on the otherwise-idle MXU: [8,128] @ [128,Bt] -> [8,Bt]; row 0 is v.
    v = jnp.dot(w2p_ref[...], h, preferred_element_type=jnp.float32)
    o_ref[...] = (v[0:1, :] + b2_ref[0]).astype(o_ref.dtype)


def pack_params(w1, b1, w2, b2):
    """One-time packing into the kernel layout (call once, outside the hot path).

    w1: [4, 100] (in, out), b1: [100], w2: [100, 1], b2: [1].
    Zero padding is numerically exact.
    """
    w1 = jnp.asarray(w1, jnp.float32)
    b1 = jnp.asarray(b1, jnp.float32).reshape(-1)
    w2 = jnp.asarray(w2, jnp.float32).reshape(-1)
    b2 = jnp.asarray(b2, jnp.float32).reshape((1,))
    w1p = (jnp.zeros((HIDDEN_PAD, FEAT_PAD), jnp.float32)
           .at[:HIDDEN, :NUM_STATE].set(w1.T)
           .at[:HIDDEN, NUM_STATE].set(b1))            # b1 folded into the matmul
    w2p = jnp.zeros((W2_ROWS, HIDDEN_PAD), jnp.float32).at[0, :HIDDEN].set(w2)
    return w1p, w2p, b2


@functools.partial(jax.jit, static_argnames=("block_batch",))
def critic_forward(x, w1p, w2p, b2, *, block_batch=8192):
    """value = state_value(relu(fc1(x))) for x: [B, NUM_STATE] -> [B, 1]."""
    B = x.shape[0]
    block_batch = _round_up(max(int(block_batch), 128), 128)   # lane-aligned tiles only
    B_pad = _round_up(B, 128)                                  # pad batch to 128 only
    bt = min(block_batch, B_pad)
    if bt == B_pad and B_pad >= 256:
        bt = max(128, _round_up(B_pad // 2, 128))              # >=2 tiles for v7x megacore
    grid = (pl.cdiv(B_pad, bt),)

    # Single fused layout op: transpose+pad x to feature-major and add the bias row.
    xT = (jnp.zeros((FEAT_PAD, B_pad), jnp.float32)
          .at[:NUM_STATE, :B].set(x.T.astype(jnp.float32))
          .at[NUM_STATE, :B].set(1.0))

    flops = 2 * B_pad * FEAT_PAD * HIDDEN_PAD + 2 * B_pad * HIDDEN_PAD * W2_ROWS
    bytes_accessed = ((FEAT_PAD * B_pad + B_pad) * 4
                      + (HIDDEN_PAD * FEAT_PAD + W2_ROWS * HIDDEN_PAD + 1) * 4)

    out = pl.pallas_call(
        critic_kernel,
        out_shape=jax.ShapeDtypeStruct((1, B_pad), jnp.float32),
        grid=grid,
        in_specs=[
            # x tiles stream over the batch axis (double-buffered by Pallas)
            pl.BlockSpec((FEAT_PAD, bt), lambda i: (0, i)),
            # weights: constant block index -> VMEM-resident across the grid
            pl.BlockSpec((HIDDEN_PAD, FEAT_PAD), lambda i: (0, 0)),
            pl.BlockSpec((W2_ROWS, HIDDEN_PAD), lambda i: (0, 0)),
            # scalar bias via SMEM (no VMEM tile / DMA stream for one float)
            pl.BlockSpec(memory_space=pltpu.MemorySpace.SMEM),
        ],
        out_specs=pl.BlockSpec((1, bt), lambda i: (0, i)),          # lane-dense row
        compiler_params=pltpu.CompilerParams(
            dimension_semantics=("parallel",),                      # megacore on v7x
        ),
        cost_estimate=pl.CostEstimate(
            flops=flops, transcendentals=0, bytes_accessed=bytes_accessed),
    )(xT, w1p, w2p, b2)

    # Back to the PyTorch layout: [B, 1]
    return out[0, :B].reshape(B, OUT)


def init_params(key):
    """Deterministic init mimicking nn.Linear's U(-1/sqrt(fan_in), 1/sqrt(fan_in)).

    Weights stored transposed vs PyTorch ([in, out]); biases are 1-D.
    """
    k1, k2, k3, k4 = jax.random.split(key, 4)
    bound1 = 1.0 / jnp.sqrt(jnp.float32(NUM_STATE))
    bound2 = 1.0 / jnp.sqrt(jnp.float32(HIDDEN))
    w1 = jax.random.uniform(k1, (NUM_STATE, HIDDEN), jnp.float32, -bound1, bound1)
    b1 = jax.random.uniform(k2, (HIDDEN,), jnp.float32, -bound1, bound1)
    w2 = jax.random.uniform(k3, (HIDDEN, OUT), jnp.float32, -bound2, bound2)
    b2 = jax.random.uniform(k4, (OUT,), jnp.float32, -bound2, bound2)
    return w1, b1, w2, b2


def _reference(x, w1, b1, w2, b2):
    return jnp.maximum(x @ w1 + b1, 0.0) @ w2 + b2


if __name__ == "__main__":
    key = jax.random.PRNGKey(0)
    k_x, k_p, k_x2 = jax.random.split(key, 3)
    w1, b1, w2, b2 = init_params(k_p)
    w1p, w2p, b2p = pack_params(w1, b1, w2, b2)     # packed once, outside the hot path

    # Small-shape check (batch=2 -> one 128-wide padded tile, grid=1).
    x_small = jax.random.normal(k_x, (2, NUM_STATE), jnp.float32)
    v_small = jax.block_until_ready(critic_forward(x_small, w1p, w2p, b2p))
    assert v_small.shape == (2, OUT)
    assert jnp.allclose(v_small, _reference(x_small, w1, b1, w2, b2),
                        atol=1e-5, rtol=1e-5)

    # Multi-tile check with an explicit small tile: B=640 -> B_pad=640, bt=256,
    # grid=3 (the last tile is a clamped boundary tile).
    x_big = jax.random.normal(k_x2, (640, NUM_STATE), jnp.float32)
    v_big = jax.block_until_ready(
        critic_forward(x_big, w1p, w2p, b2p, block_batch=256))
    assert v_big.shape == (640, OUT)
    assert jnp.allclose(v_big, _reference(x_big, w1, b1, w2, b2),
                        atol=1e-4, rtol=1e-4)

    # Default-tile path on the same batch: bt is halved to 384 so both v7x
    # TensorCores get a tile (grid=2, boundary tile clamped).
    v_def = jax.block_until_ready(critic_forward(x_big, w1p, w2p, b2p))
    assert v_def.shape == (640, OUT)
    assert jnp.allclose(v_def, _reference(x_big, w1, b1, w2, b2),
                        atol=1e-4, rtol=1e-4)

    print("KERNEL_OK")
</pallas_src>

<mosaic_0001>
module attributes {stable_mosaic.version = 11 : i64} {
  func.func @critic_kernel(%arg0: i32, %arg1: memref<8x128xf32, #tpu.memory_space<vmem>>, %arg2: memref<128x8xf32, #tpu.memory_space<vmem>>, %arg3: memref<8x128xf32, #tpu.memory_space<vmem>>, %arg4: memref<1xf32, #tpu.memory_space<smem>>, %arg5: memref<1x128xf32, #tpu.memory_space<vmem>>) attributes {dimension_semantics = [#tpu.dimension_semantics<parallel>], iteration_bounds = array<i64: 1>, scalar_prefetch = 0 : i64, scratch_operands = 0 : i64, tpu.core_type = #tpu.core_type<tc>, window_params = [{transform_indices = @transform_0, window_bounds = array<i64: 8, 128>}, {pipeline_mode = #tpu.pipeline_mode<synchronous>, transform_indices = @transform_1, window_bounds = array<i64: 128, 8>}, {pipeline_mode = #tpu.pipeline_mode<synchronous>, transform_indices = @transform_2, window_bounds = array<i64: 8, 128>}, {transform_indices = @transform_3, window_bounds = array<i64: 1>}, {transform_indices = @transform_4, window_bounds = array<i64: 1, 128>}]} {
    %c0 = arith.constant 0 : index
    %c0_0 = arith.constant 0 : index
    %0 = vector.load %arg2[%c0, %c0_0] : memref<128x8xf32, #tpu.memory_space<vmem>>, vector<128x8xf32>
    %c0_1 = arith.constant 0 : index
    %c0_2 = arith.constant 0 : index
    %1 = vector.load %arg1[%c0_1, %c0_2] : memref<8x128xf32, #tpu.memory_space<vmem>>, vector<8x128xf32>
    %cst = arith.constant dense<0.000000e+00> : vector<128x128xf32>
    %2 = tpu.matmul %0, %1, %cst {dimension_numbers = #tpu.dot_dimension_numbers<[1], [0], [0], [1], [0, 0, 1, 1], [], []>} : vector<128x8xf32>, vector<8x128xf32>, vector<128x128xf32> -> vector<128x128xf32>
    %cst_3 = arith.constant 0.000000e+00 : f32
    %3 = vector.broadcast %cst_3 : f32 to vector<128x128xf32>
    %4 = arith.maximumf %2, %3 : vector<128x128xf32>
    %c0_4 = arith.constant 0 : index
    %c0_5 = arith.constant 0 : index
    %5 = vector.load %arg3[%c0_4, %c0_5] : memref<8x128xf32, #tpu.memory_space<vmem>>, vector<8x128xf32>
    %cst_6 = arith.constant dense<0.000000e+00> : vector<8x128xf32>
    %6 = tpu.matmul %5, %4, %cst_6 {dimension_numbers = #tpu.dot_dimension_numbers<[1], [0], [0], [1], [0, 0, 1, 1], [], []>} : vector<8x128xf32>, vector<128x128xf32>, vector<8x128xf32> -> vector<8x128xf32>
    %7 = vector.extract_strided_slice %6 {offsets = [0, 0], sizes = [1, 128], strides = [1, 1]} : vector<8x128xf32> to vector<1x128xf32>
    %c0_7 = arith.constant 0 : index
    %8 = memref.load %arg4[%c0_7] : memref<1xf32, #tpu.memory_space<smem>>
    %9 = vector.broadcast %8 : f32 to vector<1x128xf32>
    %10 = arith.addf %7, %9 : vector<1x128xf32>
    %c0_8 = arith.constant 0 : index
    %c0_9 = arith.constant 0 : index
    %11 = vector.load %arg5[%c0_8, %c0_9] : memref<1x128xf32, #tpu.memory_space<vmem>>, vector<1x128xf32>
    tpu.vector_store %arg5[%c0_8, %c0_9], %10 {strides = array<i32>} : memref<1x128xf32, #tpu.memory_space<vmem>>, vector<1x128xf32>,
    return
  }
  func.func @transform_0(%arg0: i32) -> (i32, i32) {
    %c0_i32 = arith.constant 0 : i32
    %c0_i32_0 = arith.constant 0 : i32
    return %c0_i32, %arg0 : i32, i32
  }
  func.func @transform_1(%arg0: i32) -> (i32, i32) {
    %c0_i32 = arith.constant 0 : i32
    %c0_i32_0 = arith.constant 0 : i32
    %c0_i32_1 = arith.constant 0 : i32
    return %c0_i32, %c0_i32_0 : i32, i32
  }
  func.func @transform_2(%arg0: i32) -> (i32, i32) {
    %c0_i32 = arith.constant 0 : i32
    %c0_i32_0 = arith.constant 0 : i32
    %c0_i32_1 = arith.constant 0 : i32
    return %c0_i32, %c0_i32_0 : i32, i32
  }
  func.func @transform_3(%arg0: i32) -> i32 {
    %c0_i32 = arith.constant 0 : i32
    %c0_i32_0 = arith.constant 0 : i32
    return %c0_i32 : i32
  }
  func.func @transform_4(%arg0: i32) -> (i32, i32) {
    %c0_i32 = arith.constant 0 : i32
    %c0_i32_0 = arith.constant 0 : i32
    return %c0_i32, %arg0 : i32, i32
  }
}

</mosaic_0001>

<bundles_post_ra>
// kernel: critic_forward.1
= control target key start
LH: loop header
LB: loop body
LE: loop exit
PB: predicated region body
PF: predicated region fallthrough
CT: control target
= control target key end

     0   :  { %vm35_vm0 = vcmask 64512   ;;  %v462_v17 = vmov 0.0|0.0   ;;  %vm463_vm1 = vmmov 0   ;;  %v464_v18 = vmov 0.0   ;;  %s566_s0 = inlined_call_operand.vmem [shape: f32[8,128], index: 0, kind: input, shape index: {}]   ;;  %s567_s1 = inlined_call_operand.vmem [shape: f32[128,8], index: 1, kind: input, shape index: {}]   ;;  %s568_s2 = inlined_call_operand.vmem [shape: f32[8,128], index: 2, kind: input, shape index: {}]   ;;  %s569_s3 = inlined_call_operand.<no memory space> [shape: f32[1], index: 3, kind: input, shape index: {}]   ;;  %s570_s4 = inlined_call_operand.vmem [shape: f32[1,128], index: 4, kind: output, shape index: {}]  }
   0x1   :  { %v34_v0 = vld [vmem:[%s566_s0] sm:$0xff]  ;;  %v19_v2 = vld [vmem:[%s567_s1 + $0x8] sm:$0xff]  ;;  %v20_v3 = vld [vmem:[%s567_s1 + $0x10] sm:$0xff]  ;;  %435 = vmatprep.subr.bf16.mxu1 %v462_v17  ;;  %432 = vmatprep.mubr.msk.f32.mxu1 %vm463_vm1, %v464_v18  ;;  %v317_v60 = vstv %s569_s3 }
   0x2   :  { %v18_v1 = vld [vmem:[%s567_s1] sm:$0xff]  ;;  %374 = vmatprep.subr.mxu0 %v34_v0  ;;  %v21_v4 = vld [vmem:[%s567_s1 + $0x18] sm:$0xff]  ;;  %v23_v6 = vld [vmem:[%s567_s1 + $0x28] sm:$0xff] }
   0x3   :  { %376 = vmatprep.mubr.msk.f32.mxu0 %vm35_vm0, %v18_v1  ;;  %375 = vmatpush3.msra.mxu0 %v34_v0  ;;  %v22_v5 = vld [vmem:[%s567_s1 + $0x20] sm:$0xff]  ;;  %v24_v7 = vld [vmem:[%s567_s1 + $0x30] sm:$0xff]  ;;  %v25_v8 = vld [vmem:[%s567_s1 + $0x38] sm:$0xff] }
   0x4   :  { %377 = vmatmul.mubr.msk.f32.vlgmr.msra.gmra.mrb[0].mxu0 %vm35_vm0, %v19_v2  ;;  %v26_v9 = vld [vmem:[%s567_s1 + $0x40] sm:$0xff]  ;;  %v27_v10 = vld [vmem:[%s567_s1 + $0x48] sm:$0xff]  ;;  %v28_v11 = vld [vmem:[%s567_s1 + $0x50] sm:$0xff] }
   0x5   :  { %379 = vmatprep.mubr.msk.f32.mxu0 %vm35_vm0, %v20_v3  ;;  %v29_v12 = vld [vmem:[%s567_s1 + $0x58] sm:$0xff]  ;;  %v30_v13 = vld [vmem:[%s567_s1 + $0x60] sm:$0xff]  ;;  %v31_v14 = vld [vmem:[%s567_s1 + $0x68] sm:$0xff] }
   0x6   :  { %v32_v15 = vld [vmem:[%s567_s1 + $0x70] sm:$0xff]  ;;  %v33_v16 = vld [vmem:[%s567_s1 + $0x78] sm:$0xff]  ;;  %v245_v59 = vld [vmem:[%s568_s2] sm:$0xff] }
   0x8   :  { %380 = vmatmul.mubr.msk.f32.gmra.mrb[2].mxu0 %vm35_vm0, %v21_v4 }
   0x9   :  { %382 = vmatprep.mubr.msk.f32.mxu0 %vm35_vm0, %v22_v5 }
   0xc   :  { %383 = vmatmul.mubr.msk.f32.gmra.mrb[4].mxu0 %vm35_vm0, %v23_v6 }
   0xd   :  { %385 = vmatprep.mubr.msk.f32.mxu0 %vm35_vm0, %v24_v7 }
  0x10   :  { %386 = vmatmul.mubr.msk.f32.gmra.mrb[6].mxu0 %vm35_vm0, %v25_v8 }
  0x11   :  { %388 = vmatprep.mubr.msk.f32.mxu0 %vm35_vm0, %v26_v9 }
  0x14   :  { %389 = vmatmul.mubr.msk.f32.gmra.mrb[8].mxu0 %vm35_vm0, %v27_v10 }
  0x15   :  { %391 = vmatprep.mubr.msk.f32.mxu0 %vm35_vm0, %v28_v11 }
  0x18   :  { %392 = vmatmul.mubr.msk.f32.gmra.mrb[10].mxu0 %vm35_vm0, %v29_v12 }
  0x19   :  { %394 = vmatprep.mubr.msk.f32.mxu0 %vm35_vm0, %v30_v13 }
  0x1c   :  { %395 = vmatmul.mubr.msk.f32.gmra.mrb[12].mxu0 %vm35_vm0, %v31_v14 }
  0x1d   :  { %397 = vmatprep.mubr.msk.f32.mxu0 %vm35_vm0, %v32_v15 }
  0x20   :  { %398 = vmatmul.mubr.msk.f32.gmra.mrb[14].mxu0 %vm35_vm0, %v33_v16 }
  0xd7   :  { %v378_v19 = vpop.f32.mrb[0].mxu0 }
  0xd8   :  { %v230_v20 = vmax.f32 %v378_v19, 0.0  ;;  %v150_v21 = vpop.f32.mrb[1].mxu0 }
  0xd9   :  { %v229_v22 = vmax.f32 %v150_v21, 0.0 }
  0xdb   :  { %v381_v23 = vpop.f32.mrb[2].mxu0  ;;  %v436_v24 = vpack.c.bf16 %v230_v20, %v229_v22 }
  0xdc   :  { %v232_v25 = vmax.f32 %v381_v23, 0.0  ;;  %v160_v26 = vpop.f32.mrb[3].mxu0 }
  0xdd   :  { %v231_v27 = vmax.f32 %v160_v26, 0.0  ;;  %437 = vmatpush3.bf16.msra.mxu1 %v436_v24 }
  0xde   :  { %438 = vmatprep.subr.bf16.mxu1 %v462_v17 }
  0xdf   :  { %v439_v28 = vpack.c.bf16 %v232_v25, %v231_v27  ;;  %v384_v29 = vpop.f32.mrb[4].mxu0 }
  0xe0   :  { %v234_v30 = vmax.f32 %v384_v29, 0.0  ;;  %v170_v31 = vpop.f32.mrb[5].mxu0 }
  0xe1   :  { %v233_v32 = vmax.f32 %v170_v31, 0.0  ;;  %440 = vmatpush3.bf16.msra.mxu1 %v439_v28 }
  0xe2   :  { %441 = vmatprep.subr.bf16.mxu1 %v462_v17 }
  0xe3   :  { %v442_v33 = vpack.c.bf16 %v234_v30, %v233_v32  ;;  %v387_v34 = vpop.f32.mrb[6].mxu0 }
  0xe4   :  { %v236_v35 = vmax.f32 %v387_v34, 0.0  ;;  %v180_v36 = vpop.f32.mrb[7].mxu0 }
  0xe5   :  { %v235_v37 = vmax.f32 %v180_v36, 0.0  ;;  %443 = vmatpush3.bf16.msra.mxu1 %v442_v33 }
  0xe6   :  { %444 = vmatprep.subr.bf16.mxu1 %v462_v17 }
  0xe7   :  { %v445_v38 = vpack.c.bf16 %v236_v35, %v235_v37  ;;  %v390_v39 = vpop.f32.mrb[8].mxu0 }
  0xe8   :  { %v238_v40 = vmax.f32 %v390_v39, 0.0  ;;  %v190_v41 = vpop.f32.mrb[9].mxu0 }
  0xe9   :  { %v237_v42 = vmax.f32 %v190_v41, 0.0  ;;  %446 = vmatpush3.bf16.msra.mxu1 %v445_v38 }
  0xea   :  { %447 = vmatprep.subr.bf16.mxu1 %v462_v17 }
  0xeb   :  { %v448_v43 = vpack.c.bf16 %v238_v40, %v237_v42  ;;  %v393_v44 = vpop.f32.mrb[10].mxu0 }
  0xec   :  { %v240_v45 = vmax.f32 %v393_v44, 0.0  ;;  %v200_v46 = vpop.f32.mrb[11].mxu0 }
  0xed   :  { %v239_v47 = vmax.f32 %v200_v46, 0.0  ;;  %449 = vmatpush3.bf16.msra.mxu1 %v448_v43 }
  0xee   :  { %450 = vmatprep.subr.bf16.mxu1 %v462_v17 }
  0xef   :  { %v451_v48 = vpack.c.bf16 %v240_v45, %v239_v47  ;;  %v396_v49 = vpop.f32.mrb[12].mxu0 }
  0xf0   :  { %v242_v50 = vmax.f32 %v396_v49, 0.0  ;;  %v210_v51 = vpop.f32.mrb[13].mxu0 }
  0xf1   :  { %v241_v52 = vmax.f32 %v210_v51, 0.0  ;;  %452 = vmatpush3.bf16.msra.mxu1 %v451_v48 }
  0xf2   :  { %453 = vmatprep.subr.bf16.mxu1 %v462_v17 }
  0xf3   :  { %v454_v53 = vpack.c.bf16 %v242_v50, %v241_v52  ;;  %v399_v54 = vpop.f32.mrb[14].mxu0 }
  0xf4   :  { %v244_v55 = vmax.f32 %v399_v54, 0.0  ;;  %v220_v56 = vpop.f32.mrb[15].mxu0 }
  0xf5   :  { %v243_v57 = vmax.f32 %v220_v56, 0.0  ;;  %455 = vmatpush3.bf16.msra.mxu1 %v454_v53 }
  0xf6   :  { %456 = vmatprep.subr.bf16.mxu1 %v462_v17 }
  0xf7   :  { %v457_v58 = vpack.c.bf16 %v244_v55, %v243_v57 }
  0xf9   :  { %458 = vmatpush3.bf16.msra.mxu1 %v457_v58 }
  0xfc   :  { %433 = vmatmul.mubr.f32.vlgmr.msra.gmra.mrb[0].mxu1 %v245_v59 }
 0x1cf   :  { %v312_v61 = vpop.f32.mrb[0].mxu1 }
 0x1d0   :  { %v318_v62 = vadd.f32 %v317_v60, %v312_v61  ;;  %v434_v63 = vpop.f32.mrb[1].mxu1 }
 0x1d2   :  { %319 = vst [vmem:[%s570_s4] sm:$0x1] %v318_v62 }

</bundles_post_ra>
